<compile_context>
chip_gen: v7x
topology: tpu7x:2x2x1
jax: 0.10.0
libtpu: 0.0.40
codegen_flags: <defaults>
</compile_context>

<pallas_src>
import functools

import jax
import jax.numpy as jnp
from jax import lax
from jax.experimental import pallas as pl
from jax.experimental.pallas import tpu as pltpu


def _round_up(x, m):
    return (x + m - 1) // m * m


def _pick_tile(n, candidates):
    for c in candidates:
        if n % c == 0:
            return c
    return n  # full dimension (always legal)


# --------------------------- tiled Linear kernel ----------------------------

def _linear_kernel(x_ref, w_ref, b_ref, o_ref, acc_ref):
    k = pl.program_id(2)

    @pl.when(k == 0)
    def _():
        acc_ref[...] = jnp.zeros_like(acc_ref)

    acc_ref[...] += jnp.dot(x_ref[...], w_ref[...],
                            preferred_element_type=jnp.float32)

    @pl.when(k == pl.num_programs(2) - 1)
    def _():
        o_ref[...] = (acc_ref[...] + b_ref[...]).astype(o_ref.dtype)


def linear(x2d, w_t, b, out_dtype=jnp.float32):
    """x2d: (M, K); w_t: (K, N) pre-transposed; b: (N,) -> (M, N).

    bf16 MXU inputs, f32 accumulation, K-tiled with a VMEM accumulator.
    """
    M, K = x2d.shape
    N = w_t.shape[1]
    if M >= 256:
        tm = 256
        Mp = _round_up(M, tm)
    else:
        Mp = _round_up(M, 8)
        tm = Mp
    if Mp != M:
        x2d = jnp.zeros((Mp, K), x2d.dtype).at[:M].set(x2d)
    tn = _pick_tile(N, [512, 256, 128])
    tk = _pick_tile(K, [512, 256, 128])

    x_b = x2d.astype(jnp.bfloat16)
    w_b = w_t.astype(jnp.bfloat16)
    b2 = b.reshape(1, -1).astype(jnp.float32)

    cost = pl.CostEstimate(
        flops=2 * Mp * K * N, transcendentals=0,
        bytes_accessed=2 * (Mp * K + K * N) + 4 * (Mp * N + N))

    out = pl.pallas_call(
        _linear_kernel,
        out_shape=jax.ShapeDtypeStruct((Mp, N), out_dtype),
        grid_spec=pltpu.PrefetchScalarGridSpec(
            num_scalar_prefetch=0,
            grid=(Mp // tm, N // tn, K // tk),
            in_specs=[
                pl.BlockSpec((tm, tk), lambda i, j, k: (i, k)),
                pl.BlockSpec((tk, tn), lambda i, j, k: (k, j)),
                pl.BlockSpec((1, tn), lambda i, j, k: (0, j)),
            ],
            out_specs=pl.BlockSpec((tm, tn), lambda i, j, k: (i, j)),
            scratch_shapes=[pltpu.VMEM((tm, tn), jnp.float32)],
        ),
        compiler_params=pltpu.CompilerParams(
            dimension_semantics=("parallel", "parallel", "arbitrary")),
        cost_estimate=cost,
    )(x_b, w_b, b2)
    return out[:M]


# --------------------------- GRU recurrence kernels ---------------------------

def _gru_cell(gi_t, h_prev, whh_ref, bhh_ref, Hp):
    """One GRU step. gi_t already contains x_t @ W_ih^T + b_ih. h_prev is f32."""
    gh = jnp.dot(h_prev.astype(whh_ref.dtype), whh_ref[...],
                 preferred_element_type=jnp.float32) + bhh_ref[...]
    gi = gi_t.astype(jnp.float32)
    r = jax.nn.sigmoid(gi[:, :Hp] + gh[:, :Hp])
    z = jax.nn.sigmoid(gi[:, Hp:2 * Hp] + gh[:, Hp:2 * Hp])
    n = jnp.tanh(gi[:, 2 * Hp:] + r * gh[:, 2 * Hp:])
    return (1.0 - z) * n + z * h_prev


def _gru_chunk_fused_kernel(gi_ref, whh_ref, bhh_ref, h0_ref,
                            wih_nxt_ref, bih_nxt_ref,
                            gi_nxt_ref, h_carry, h_chunk, *, unroll):
    # gi_ref     : (chunk, Bp, 3Hp) bf16   precomputed input gates (incl. b_ih)
    # whh_ref    : (Hp, 3Hp)        bf16   recurrent weights (pre-transposed)
    # bhh_ref    : (1, 3Hp)         f32
    # h0_ref     : (Bp, Hp)         f32
    # wih_nxt_ref: (Hp, 3Hp)        bf16   next layer's input weights
    # bih_nxt_ref: (1, 3Hp)         f32
    # gi_nxt_ref : (chunk, Bp, 3Hp) bf16   next layer's input gates (output)
    @pl.when(pl.program_id(0) == 0)
    def _():
        h_carry[...] = h0_ref[...]

    chunk, Bp, _ = gi_ref.shape
    Hp = h0_ref.shape[-1]

    def step(t, h_prev):
        h_new = _gru_cell(gi_ref[t], h_prev, whh_ref, bhh_ref, Hp)
        h_chunk[t] = h_new
        return h_new

    h_carry[...] = lax.fori_loop(0, chunk, step, h_carry[...], unroll=unroll)

    # Fused next-layer input projection: h never round-trips HBM.
    h_flat = h_chunk[...].reshape(chunk * Bp, Hp).astype(wih_nxt_ref.dtype)
    gi_nxt = jnp.dot(h_flat, wih_nxt_ref[...],
                     preferred_element_type=jnp.float32) + bih_nxt_ref[...]
    gi_nxt_ref[...] = gi_nxt.reshape(chunk, Bp, 3 * Hp).astype(gi_nxt_ref.dtype)


def _gru_chunk_last_kernel(gi_ref, whh_ref, bhh_ref, h0_ref,
                           hseq_ref, h_carry, *, unroll):
    @pl.when(pl.program_id(0) == 0)
    def _():
        h_carry[...] = h0_ref[...]

    chunk = gi_ref.shape[0]
    Hp = h0_ref.shape[-1]

    def step(t, h_prev):
        h_new = _gru_cell(gi_ref[t], h_prev, whh_ref, bhh_ref, Hp)
        hseq_ref[t] = h_new.astype(hseq_ref.dtype)
        return h_new

    h_carry[...] = lax.fori_loop(0, chunk, step, h_carry[...], unroll=unroll)


def gru_layer_fused(gi, w_hh_t, b_hh, h0, w_ih_nxt_t, b_ih_nxt, *, chunk, unroll):
    """Recurrence over a layer + fused next-layer input projection."""
    Tp, Bp, threeHp = gi.shape
    Hp = threeHp // 3
    num_chunks = Tp // chunk
    kern = functools.partial(_gru_chunk_fused_kernel, unroll=unroll)
    return pl.pallas_call(
        kern,
        out_shape=jax.ShapeDtypeStruct((Tp, Bp, threeHp), jnp.bfloat16),
        grid_spec=pltpu.PrefetchScalarGridSpec(
            num_scalar_prefetch=0,
            grid=(num_chunks,),
            in_specs=[
                pl.BlockSpec((chunk, Bp, threeHp), lambda c: (c, 0, 0)),  # gi
                pl.BlockSpec((Hp, threeHp), lambda c: (0, 0)),            # W_hh^T
                pl.BlockSpec((1, threeHp), lambda c: (0, 0)),             # b_hh
                pl.BlockSpec((Bp, Hp), lambda c: (0, 0)),                 # h0
                pl.BlockSpec((Hp, threeHp), lambda c: (0, 0)),            # W_ih_next^T
                pl.BlockSpec((1, threeHp), lambda c: (0, 0)),             # b_ih_next
            ],
            out_specs=pl.BlockSpec((chunk, Bp, threeHp), lambda c: (c, 0, 0)),
            scratch_shapes=[pltpu.VMEM((Bp, Hp), jnp.float32),
                            pltpu.VMEM((chunk, Bp, Hp), jnp.float32)],
        ),
        compiler_params=pltpu.CompilerParams(
            dimension_semantics=("arbitrary",)),   # sequential recurrence
    )(gi, w_hh_t, b_hh.reshape(1, -1), h0, w_ih_nxt_t, b_ih_nxt.reshape(1, -1))


def gru_layer_last(gi, w_hh_t, b_hh, h0, *, chunk, unroll):
    """Recurrence over the last layer; emits the hidden sequence (bf16)."""
    Tp, Bp, threeHp = gi.shape
    Hp = threeHp // 3
    num_chunks = Tp // chunk
    kern = functools.partial(_gru_chunk_last_kernel, unroll=unroll)
    return pl.pallas_call(
        kern,
        out_shape=jax.ShapeDtypeStruct((Tp, Bp, Hp), jnp.bfloat16),
        grid_spec=pltpu.PrefetchScalarGridSpec(
            num_scalar_prefetch=0,
            grid=(num_chunks,),
            in_specs=[
                pl.BlockSpec((chunk, Bp, threeHp), lambda c: (c, 0, 0)),
                pl.BlockSpec((Hp, threeHp), lambda c: (0, 0)),
                pl.BlockSpec((1, threeHp), lambda c: (0, 0)),
                pl.BlockSpec((Bp, Hp), lambda c: (0, 0)),
            ],
            out_specs=pl.BlockSpec((chunk, Bp, Hp), lambda c: (c, 0, 0)),
            scratch_shapes=[pltpu.VMEM((Bp, Hp), jnp.float32)],
        ),
        compiler_params=pltpu.CompilerParams(
            dimension_semantics=("arbitrary",)),
    )(gi, w_hh_t, b_hh.reshape(1, -1), h0)


def _choose_chunk(T, Bp, Hp, budget=10 * 1024 * 1024):
    """Largest T-chunk whose double-buffered bf16 blocks fit a conservative VMEM budget."""
    chunk = min(128, _round_up(max(T, 1), 8))
    while chunk > 8:
        stream = 2 * (chunk * Bp * 3 * Hp * 2) * 2   # gi in + gi_next/h out (bf16, x2 buffers)
        scratch = chunk * Bp * Hp * 4                 # f32 h_chunk scratch
        weights = 2 * (Hp * 3 * Hp * 2) * 2           # W_hh + W_ih_next (bf16, x2 buffers)
        if stream + scratch + weights <= budget:
            break
        chunk //= 2
    return chunk


# --------------------------- parameter re-layout -----------------------------

def _pad_gates_t(w, in_p, H, Hp):
    """PyTorch (3H, in_dim) -> transposed, per-gate lane-padded (in_p, 3*Hp)."""
    in_dim = w.shape[1]
    out = jnp.zeros((in_p, 3 * Hp), jnp.float32)
    for g in range(3):
        out = out.at[:in_dim, g * Hp:g * Hp + H].set(w[g * H:(g + 1) * H, :].T)
    return out


def _pad_gates_b(b, H, Hp):
    out = jnp.zeros((3 * Hp,), jnp.float32)
    for g in range(3):
        out = out.at[g * Hp:g * Hp + H].set(b[g * H:(g + 1) * H])
    return out


# ------------------------------- Model wrapper -------------------------------

class GRUModelPallas:
    def __init__(self, vocab_size, embedding_dim, hidden_dim, num_layers,
                 dropout, key, embedding_matrix=None):
        self.vocab_size = vocab_size
        self.embedding_dim = embedding_dim
        self.hidden_dim = hidden_dim
        self.num_layers = num_layers
        self.dropout = dropout

        H = hidden_dim
        self.Hp = _round_up(H, 128)
        self.Ep = _round_up(embedding_dim, 128)
        self.Vp = _round_up(vocab_size, 128)

        keys = jax.random.split(key, 1 + 4 * num_layers + 2)
        k = iter(keys)

        if embedding_matrix is not None:
            self.embedding = jnp.asarray(embedding_matrix, jnp.float32)
            _ = next(k)
        else:
            self.embedding = jax.random.normal(
                next(k), (vocab_size, embedding_dim), jnp.float32)

        bound = 1.0 / float(hidden_dim) ** 0.5
        self.w_ih, self.w_hh, self.b_ih, self.b_hh = [], [], [], []
        for layer in range(num_layers):
            in_dim = embedding_dim if layer == 0 else hidden_dim
            self.w_ih.append(jax.random.uniform(
                next(k), (3 * H, in_dim), jnp.float32, -bound, bound))
            self.w_hh.append(jax.random.uniform(
                next(k), (3 * H, H), jnp.float32, -bound, bound))
            self.b_ih.append(jax.random.uniform(
                next(k), (3 * H,), jnp.float32, -bound, bound))
            self.b_hh.append(jax.random.uniform(
                next(k), (3 * H,), jnp.float32, -bound, bound))

        self.fc_w = jax.random.uniform(
            next(k), (vocab_size, H), jnp.float32, -bound, bound)
        self.fc_b = jax.random.uniform(
            next(k), (vocab_size,), jnp.float32, -bound, bound)

        # Kernel-side parameters: pre-transposed, per-gate lane-padded,
        # weights stored bf16 (f32 accumulation in-kernel), biases f32.
        self.w_ih_t, self.w_hh_t, self.b_ih_p, self.b_hh_p = [], [], [], []
        for layer in range(num_layers):
            in_p = self.Ep if layer == 0 else self.Hp
            self.w_ih_t.append(
                _pad_gates_t(self.w_ih[layer], in_p, H, self.Hp).astype(jnp.bfloat16))
            self.w_hh_t.append(
                _pad_gates_t(self.w_hh[layer], self.Hp, H, self.Hp).astype(jnp.bfloat16))
            self.b_ih_p.append(_pad_gates_b(self.b_ih[layer], H, self.Hp))
            self.b_hh_p.append(_pad_gates_b(self.b_hh[layer], H, self.Hp))

        self.fc_w_t = (jnp.zeros((self.Hp, self.Vp), jnp.float32)
                       .at[:H, :vocab_size].set(self.fc_w.T)).astype(jnp.bfloat16)
        self.fc_b_p = jnp.zeros((self.Vp,), jnp.float32
                                ).at[:vocab_size].set(self.fc_b)

        # Layer-0: fuse embedding lookup with the input projection by
        # precomputing a bf16 (V, 3*Hp) gate table = E @ W_ih0^T + b_ih0.
        emb_p = jnp.zeros((vocab_size, self.Ep), jnp.float32
                          ).at[:, :embedding_dim].set(self.embedding)
        self.emb_gate_table = linear(
            emb_p, self.w_ih_t[0], self.b_ih_p[0]).astype(jnp.bfloat16)

    def __call__(self, x, hidden_state=None):
        # x: (B, T) int32 token ids (batch_first, as in the PyTorch module)
        B, T = x.shape
        H, Hp, Vp = self.hidden_dim, self.Hp, self.Vp
        Bp = _round_up(B, 8)
        chunk = _choose_chunk(T, Bp, Hp)
        Tp = _round_up(T, chunk)
        unroll = chunk if chunk <= 32 else 8

        # Layer-0 input gates: gather on x.T so the result is already (T,B,3Hp);
        # a single padded write (no extra transpose / pad passes over HBM).
        gi0 = jnp.take(self.emb_gate_table, x.T, axis=0)      # (T, B, 3Hp) bf16
        if (Tp, Bp) != (T, B):
            gi = jnp.zeros((Tp, Bp, 3 * Hp), jnp.bfloat16).at[:T, :B, :].set(gi0)
        else:
            gi = gi0

        if hidden_state is None:
            h0_all = jnp.zeros((self.num_layers, Bp, Hp), jnp.float32)
        else:
            hs = jnp.asarray(hidden_state, jnp.float32)
            h0_all = jnp.zeros((self.num_layers, Bp, Hp), jnp.float32
                               ).at[:, :B, :H].set(hs)

        h_seq = None
        for layer in range(self.num_layers):
            last = (layer == self.num_layers - 1)
            if not last:
                # Recurrence + fused next-layer input projection (gi stays bf16).
                gi = gru_layer_fused(gi, self.w_hh_t[layer], self.b_hh_p[layer],
                                     h0_all[layer], self.w_ih_t[layer + 1],
                                     self.b_ih_p[layer + 1],
                                     chunk=chunk, unroll=unroll)
            else:
                h_seq = gru_layer_last(gi, self.w_hh_t[layer], self.b_hh_p[layer],
                                       h0_all[layer], chunk=chunk, unroll=unroll)
            # TODO(synk): inter-layer dropout omitted (stochastic; eval-mode semantics)

        logits_p = linear(h_seq.reshape(Tp * Bp, Hp), self.fc_w_t, self.fc_b_p)
        logits = logits_p.reshape(Tp, Bp, Vp)[:T, :B, :self.vocab_size]
        logits = jnp.transpose(logits, (1, 0, 2))              # (B, T, V)
        # The PyTorch module returns the *input* hidden_state unchanged.
        return logits, hidden_state


# ------------------------------ pure-JAX reference ---------------------------

def reference_forward(model, x, hidden_state=None):
    B, T = x.shape
    H = model.hidden_dim
    emb = jnp.take(model.embedding, x, axis=0)                 # (B, T, E)
    h0_all = (jnp.zeros((model.num_layers, B, H), jnp.float32)
              if hidden_state is None else hidden_state)
    seq = emb
    for layer in range(model.num_layers):
        wih, whh = model.w_ih[layer], model.w_hh[layer]
        bih, bhh = model.b_ih[layer], model.b_hh[layer]

        def step(h, x_t):
            gi = x_t @ wih.T + bih
            gh = h @ whh.T + bhh
            r = jax.nn.sigmoid(gi[:, :H] + gh[:, :H])
            z = jax.nn.sigmoid(gi[:, H:2 * H] + gh[:, H:2 * H])
            n = jnp.tanh(gi[:, 2 * H:] + r * gh[:, 2 * H:])
            h_new = (1.0 - z) * n + z * h
            return h_new, h_new

        _, ys = jax.lax.scan(step, h0_all[layer], jnp.transpose(seq, (1, 0, 2)))
        seq = jnp.transpose(ys, (1, 0, 2))
    return seq @ model.fc_w.T + model.fc_b


if __name__ == "__main__":
    vocab_size, embedding_dim, hidden_dim, num_layers = 50, 32, 32, 2
    B, T = 2, 8

    key = jax.random.PRNGKey(0)
    k_model, k_tok = jax.random.split(key)
    model = GRUModelPallas(vocab_size, embedding_dim, hidden_dim, num_layers,
                           dropout=0.0, key=k_model)

    x = jax.random.randint(k_tok, (B, T), 0, vocab_size, dtype=jnp.int32)

    logits, hidden_out = model(x, hidden_state=None)
    logits = jax.block_until_ready(logits)

    ref = jax.block_until_ready(reference_forward(model, x))
    assert logits.shape == (B, T, vocab_size)
    assert hidden_out is None
    err = float(jnp.max(jnp.abs(logits - ref)))
    # bf16 streaming / bf16 MXU inputs with f32 accumulation vs. a pure-f32 reference.
    assert err < 2e-2, err

    print("KERNEL_OK")
</pallas_src>

<mosaic_0001>
module attributes {stable_mosaic.version = 11 : i64} {
  func.func @_linear_kernel(%arg0: i32, %arg1: i32, %arg2: i32, %arg3: memref<56x128xbf16, #tpu.memory_space<vmem>>, %arg4: memref<128x128xbf16, #tpu.memory_space<vmem>>, %arg5: memref<1x128xf32, #tpu.memory_space<vmem>>, %arg6: memref<56x128xf32, #tpu.memory_space<vmem>>, %arg7: memref<56x128xf32, #tpu.memory_space<vmem>>) attributes {dimension_semantics = [#tpu.dimension_semantics<parallel>, #tpu.dimension_semantics<parallel>, #tpu.dimension_semantics<arbitrary>], iteration_bounds = array<i64: 1, 3, 1>, scalar_prefetch = 0 : i64, scratch_operands = 1 : i64, tpu.core_type = #tpu.core_type<tc>, window_params = [{transform_indices = @transform_0, window_bounds = array<i64: 56, 128>}, {transform_indices = @transform_1, window_bounds = array<i64: 128, 128>}, {transform_indices = @transform_2, window_bounds = array<i64: 1, 128>}, {transform_indices = @transform_3, window_bounds = array<i64: 56, 128>}]} {
    %c0_i32 = arith.constant 0 : i32
    %0 = arith.cmpi eq, %arg2, %c0_i32 : i32
    %1 = arith.extui %0 : i1 to i32
    %c0_i32_0 = arith.constant 0 : i32
    %2 = arith.cmpi ne, %1, %c0_i32_0 : i32
    scf.if %2 {
      %cst_10 = arith.constant 0.000000e+00 : f32
      %12 = vector.broadcast %cst_10 : f32 to vector<56x128xf32>
      %c0_11 = arith.constant 0 : index
      %c0_12 = arith.constant 0 : index
      %13 = vector.load %arg7[%c0_11, %c0_12] : memref<56x128xf32, #tpu.memory_space<vmem>>, vector<56x128xf32>
      tpu.vector_store %arg7[%c0_11, %c0_12], %12 {strides = array<i32>} : memref<56x128xf32, #tpu.memory_space<vmem>>, vector<56x128xf32>,
    } else {
    }
    %c0 = arith.constant 0 : index
    %c0_1 = arith.constant 0 : index
    %3 = vector.load %arg7[%c0, %c0_1] : memref<56x128xf32, #tpu.memory_space<vmem>>, vector<56x128xf32>
    %c0_2 = arith.constant 0 : index
    %c0_3 = arith.constant 0 : index
    %4 = vector.load %arg3[%c0_2, %c0_3] : memref<56x128xbf16, #tpu.memory_space<vmem>>, vector<56x128xbf16>
    %c0_4 = arith.constant 0 : index
    %c0_5 = arith.constant 0 : index
    %5 = vector.load %arg4[%c0_4, %c0_5] : memref<128x128xbf16, #tpu.memory_space<vmem>>, vector<128x128xbf16>
    %cst = arith.constant dense<0.000000e+00> : vector<56x128xf32>
    %6 = tpu.matmul %4, %5, %cst {dimension_numbers = #tpu.dot_dimension_numbers<[1], [0], [0], [1], [0, 0, 1, 1], [], []>} : vector<56x128xbf16>, vector<128x128xbf16>, vector<56x128xf32> -> vector<56x128xf32>
    %7 = arith.addf %3, %6 : vector<56x128xf32>
    %c0_6 = arith.constant 0 : index
    %c0_7 = arith.constant 0 : index
    %8 = vector.load %arg7[%c0_6, %c0_7] : memref<56x128xf32, #tpu.memory_space<vmem>>, vector<56x128xf32>
    tpu.vector_store %arg7[%c0_6, %c0_7], %7 {strides = array<i32>} : memref<56x128xf32, #tpu.memory_space<vmem>>, vector<56x128xf32>,
    %c0_i32_8 = arith.constant 0 : i32
    %9 = arith.cmpi eq, %arg2, %c0_i32_8 : i32
    %10 = arith.extui %9 : i1 to i32
    %c0_i32_9 = arith.constant 0 : i32
    %11 = arith.cmpi ne, %10, %c0_i32_9 : i32
    scf.if %11 {
      %c0_10 = arith.constant 0 : index
      %c0_11 = arith.constant 0 : index
      %12 = vector.load %arg7[%c0_10, %c0_11] : memref<56x128xf32, #tpu.memory_space<vmem>>, vector<56x128xf32>
      %c0_12 = arith.constant 0 : index
      %c0_13 = arith.constant 0 : index
      %13 = vector.load %arg5[%c0_12, %c0_13] : memref<1x128xf32, #tpu.memory_space<vmem>>, vector<1x128xf32>
      %14 = vector.broadcast %13 : vector<1x128xf32> to vector<56x128xf32>
      %15 = arith.addf %12, %14 : vector<56x128xf32>
      %c0_14 = arith.constant 0 : index
      %c0_15 = arith.constant 0 : index
      %16 = vector.load %arg6[%c0_14, %c0_15] : memref<56x128xf32, #tpu.memory_space<vmem>>, vector<56x128xf32>
      tpu.vector_store %arg6[%c0_14, %c0_15], %15 {strides = array<i32>} : memref<56x128xf32, #tpu.memory_space<vmem>>, vector<56x128xf32>,
    } else {
    }
    return
  }
  func.func @transform_0(%arg0: i32, %arg1: i32, %arg2: i32) -> (i32, i32) {
    %c0_i32 = arith.constant 0 : i32
    return %arg0, %arg2 : i32, i32
  }
  func.func @transform_1(%arg0: i32, %arg1: i32, %arg2: i32) -> (i32, i32) {
    %c0_i32 = arith.constant 0 : i32
    return %arg2, %arg1 : i32, i32
  }
  func.func @transform_2(%arg0: i32, %arg1: i32, %arg2: i32) -> (i32, i32) {
    %c0_i32 = arith.constant 0 : i32
    %c0_i32_0 = arith.constant 0 : i32
    return %c0_i32, %arg1 : i32, i32
  }
  func.func @transform_3(%arg0: i32, %arg1: i32, %arg2: i32) -> (i32, i32) {
    %c0_i32 = arith.constant 0 : i32
    return %arg0, %arg1 : i32, i32
  }
}

</mosaic_0001>

<bundles_post_ra>
// kernel: tpu_custom_call.1
= control target key start
LH: loop header
LB: loop body
LE: loop exit
PB: predicated region body
PF: predicated region fallthrough
CT: control target
= control target key end

     0   :  { %8 = vsyncpa [#allocation4], 0  ;;  %s1184_s0 = inlined_call_operand.hbm [shape: bf16[56,128], index: 0, kind: input, shape index: {}]   ;;  %s1185_s1 = inlined_call_operand.hbm [shape: bf16[128,384], index: 1, kind: input, shape index: {}]   ;;  %s1186_s2 = inlined_call_operand.vmem [shape: f32[1,384], index: 2, kind: input, shape index: {}]   ;;  %s1187_s3 = inlined_call_operand.hbm [shape: f32[56,384], index: 3, kind: output, shape index: {}]  }
   0x1   :  { %9 = vsyncpa [#allocation7], 0 }
   0x2   :  { %11 = vsyncpa [#allocation7 + $0x1], 0 }
   0x3   :  { %12 = vsyncpa [#allocation5], 0 }
   0x4   :  { %14 = vsyncpa [#allocation5 + $0x1], 0  ;;  %s952_s12 = smov 0   ;;  %s954_s13 = smov 0  }
   0x5   :  { %s956_s14 = smov 0   ;;  %s958_s15 = smov 0  }
   0x6   :  { %s960_s16 = smov 0   ;;  %s962_s17 = smov 0  }
   0x7 LB: > { %s607_s18 = sadd.s32 4294967295, %s921_s17   ;;  %s608_s19 = sadd.s32 4294967294, %s921_s17   ;;  %s921_s17 = sphi %s962_s17, %s20_s17   ;;  %s917_s16 = sphi %s960_s16, %s1214_s16   ;;  %s913_s15 = sphi %s958_s15, %s1213_s15   ;;  %s909_s14 = sphi %s956_s14, %s1212_s14   ;;  %s905_s13 = sphi %s954_s13, %s1211_s13   ;;  %s901_s12 = sphi %s952_s12, %s1210_s12  }
   0x8   : > { %p83_p0 = scmp.ne.s32.totalorder %s909_s14, %s905_s13  ;;  %p84_p1 = scmp.eq.s32.totalorder %s921_s17, 0 }
   0x9   : > { %p89_p2 = scmp.ne.s32.totalorder %s905_s13, %s901_s12  ;;  %p989_p3 = scmp.eq.s32.totalorder %s607_s18, 0 }
   0xa   : > { %p993_p4 = por %p84_p1, %p83_p0  ;;  %p141_p5 = scmp.eq.s32.totalorder %s607_s18, 2 }
   0xb   : > { %s1195_s20 = scalar_select %p989_p3, 1, 0 }
   0xc   : > { %p999_p6 = por %p989_p3, %p89_p2  ;;  %p147_p7 = scmp.eq.s32.totalorder %s608_s19, 2 }
   0xd   : > { %p1003_p8 = por %p141_p5, %p83_p0  ;;  %p609_p9 = scmp.ge.s32.totalorder %s921_s17, 1 }
   0xe   : > { %s1197_s22 = scalar_select %p999_p6, 1, 0 }
   0xf   : > { %s1198_s23 = scalar_select %p1003_p8, 1, 0 }
  0x10   : > { %p1008_p10 = por %p147_p7, %p89_p2  ;;  %p154_p11 = scmp.lt.s32.totalorder %s921_s17, 4 }
  0x11   : > { %s923_s26 = smov [#allocation3]   ;;  %p707_p0 = scmp.lt.s32.totalorder %s921_s17, 3 }
  0x12   : > { %s1199_s24 = scalar_select %p1008_p10, 1, 0 }
  0x13   : > { %p1013_p12 = pnand %p609_p9, %p154_p11  ;;  %s170_s27 = sshll.u32 %s923_s26, 4  ;;  %s171_s27 = int_to_ptr.vmem [resolvable:$true] %s170_s27 }
  0x14   : > { %p1028_p2 = pnand %p707_p0, %p993_p4  ;;  %s35_s30 = sadd.s32 1, %s917_s16 }
  0x15   : > { %s1200_s25 = scalar_select %p1013_p12, 1, 0 }
  0x16   : > { %p694_p13 = pneg %p1013_p12  ;;  %s777_s6 = scalar_lea.hbm %s1184_s0, 448 }
  0x17   : > { %s1202_s29 = scalar_select %p1028_p2, 1, 0 }
  0x18   : > { %p1022_p1 = pnand %p694_p13, %p989_p3  ;;  %p778_p5 = scmp.ne.s32.totalorder %s1184_s0, %s777_s6 }
  0x19   : > { %p784_p4 = scmp.lt.u32.totalorder %s777_s6, %s1184_s0 }
  0x1a   : > { %p779_p7 = pneg %p1022_p1 }
  0x1c   : > { %p780_p9 = pnand %p779_p7, %p778_p5 }
  0x1e   : > { %p781_p11 = pneg %p780_p9 }
  0x20   : > { %p786_p13 = pnand %p784_p4, %p781_p11 }
  0x22   : > { %789 = shalt.err (!%p786_p13)
}
  0x23   : > { %s790_s11 = scalar_lea.vmem %s171_s27, 448  ;;  %p798_p6 = scmp.lt.s32.totalorder %s171_s27, %s171_s27 }
  0x24   : > { %p791_p0 = scmp.ne.s32.totalorder %s171_s27, %s790_s11  ;;  %p799_p3 = scmp.lt.s32.totalorder %s790_s11, %s790_s11 }
  0x26   : > { %p793_p10 = pnand %p791_p0, %p779_p7  ;;  %p800_p12 = por %p799_p3, %p798_p6 }
  0x28   : > { %p794_p8 = pneg %p793_p10 }
  0x2a   : > { %p801_p2 = pnand %p800_p12, %p794_p8 }
  0x2c   : > { %804 = shalt.err (!%p801_p2)
}
  0x2d   : > { %s1194_s18 = smov 64   ;;  %s925_s19 = smov 4  }
  0x2e   : > { %697 = dma.hbm_to_vmem [thread:$0]  (!%p1022_p1), %s1184_s0, 448, %s171_s27, [#allocation4], %s1194_s18, %s1194_s18, %s925_s19  }
  0x2f   : > { %p37_p10 = scmp.ge.s32.totalorder %s35_s30, 3  ;;  %s76_s4 = sadd.s32 1, %s909_s14 }
  0x30   : > { %s184_s5 = sand.u32 1, %s909_s14   ;;  %s613_s8 = sshll.u32 %s917_s16, 6 }
  0x31   : > { %s1216_s30 = smov (%p37_p10, %s35_s30), 0  ;;  %s612_s6 = sshll.u32 %s184_s5, 6 }
  0x32   : > { %s72_s7 = ssub.s32 %s917_s16, %s1216_s30  ;;  %s1062_s10 = scalar_lea.hbm %s1185_s1, %s613_s8 }
  0x33   : > { %p74_p3 = scmp.eq.s32.totalorder %s72_s7, 0  ;;  %s188_s27 = scalar_lea.vmem [#allocation6], %s612_s6 }
  0x34   : > { %s197_s11 = sshll.u32 %s188_s27, 4  ;;  %s1069_s26 = scalar_lea.sflag [#allocation7], %s184_s5  ;;  %s1067_s11 = int_to_ptr.vmem [resolvable:$true] %s197_s11 }
  0x35   : > { %s1065_s21 = scalar_select %p74_p3, %s909_s14, %s76_s4  }
  0x36   : > { %s805_s18 = scalar_lea.hbm %s1062_s10, 1024  ;;  %p1203_p8 = scmp.ne.s32.totalorder %s1202_s29, 0 }
  0x37   : > { %p806_p6 = scmp.ne.s32.totalorder %s1062_s10, %s805_s18  ;;  %s810_s28 = scalar_lea.hbm %s1185_s1, 3072 }
  0x38   : > { %p807_p12 = pneg %p1203_p8  ;;  %p811_p5 = scmp.lt.u32.totalorder %s1062_s10, %s1185_s1 }
  0x39   : > { %p812_p7 = scmp.lt.u32.totalorder %s810_s28, %s805_s18  ;;  %p814_p11 = scmp.lt.u32.totalorder %s805_s18, %s1062_s10 }
  0x3a   : > { %p808_p1 = pnand %p807_p12, %p806_p6 }
  0x3b   : > { %p813_p9 = por %p812_p7, %p811_p5 }
  0x3c   : > { %p809_p2 = pneg %p808_p1 }
  0x3d   : > { %p815_p4 = por %p814_p11, %p813_p9 }
  0x3f   : > { %p816_p13 = pnand %p815_p4, %p809_p2 }
  0x41   : > { %819 = shalt.err (!%p816_p13)
}
  0x42   : > { %s820_s4 = scalar_lea.vmem %s1067_s11, 1024  ;;  %s926_s5 = smov [#allocation6]  }
  0x43   : > { %p821_p0 = scmp.ne.s32.totalorder %s1067_s11, %s820_s4  ;;  %s825_s27 = sshll.u32 %s926_s5, 4  ;;  %s826_s27 = int_to_ptr.vmem [resolvable:$false] %s825_s27 }
  0x44   : > { %s827_s7 = scalar_lea.vmem %s826_s27, 2048  ;;  %p828_p6 = scmp.lt.s32.totalorder %s1067_s11, %s826_s27 }
  0x45   : > { %p823_p10 = pnand %p821_p0, %p807_p12  ;;  %p829_p1 = scmp.lt.s32.totalorder %s827_s7, %s820_s4 }
  0x47   : > { %p824_p3 = pneg %p823_p10  ;;  %p830_p5 = por %p829_p1, %p828_p6 }
  0x49   : > { %p831_p7 = pnand %p830_p5, %p824_p3 }
  0x4b   : > { %834 = shalt.err (!%p831_p7)
}
  0x4c   : > { %s927_s18 = smov 192   ;;  %s1204_s8 = smov 64  }
  0x4d   : > { %701 = dma.hbm_to_vmem [thread:$0]  (!%p1203_p8), %s1062_s10, 1024, %s1067_s11, %s1069_s26, %s927_s18, %s1204_s8, %s925_s19  }
  0x4e   : > { %p1205_p12 = scmp.ne.s32.totalorder %s1200_s25, 0 }
  0x4f   : > { %p1206_p2 = scmp.ne.s32.totalorder (!%p1205_p12), %s1195_s20, 0 }
  0x50   : > { %215 = sbr.rel (%p1205_p12) target bundleno = 358 (0x166), region = 32 }
  0x57   : > { %888 = dma.done.wait (%p1206_p2), [#allocation4], 448  }
  0x58   : > { %890 = vsyncadd (%p1206_p2), [#allocation4], 4294966848  ;;  %s1106_s28 = sand.u32 1, %s905_s13   ;;  %p1207_p8 = scmp.ne.s32.totalorder %s1197_s22, 0 }
  0x59   : > { %s616_s29 = sshll.u32 %s1106_s28, 6  ;;  %s222_s6 = scalar_lea.sflag [#allocation7], %s1106_s28 }
  0x5a   : > { %s1110_s9 = scalar_lea.vmem [#allocation6], %s616_s29 }
  0x5b   : > { %892 = dma.done.wait (%p1207_p8), %s222_s6, 1024  }
  0x5c   : > { %894 = vsyncadd (%p1207_p8), %s222_s6, 4294966272  ;;  %v765_v0 = vld [vmem:[%s1110_s9] sm:$0xff]   ;;  %v766_v1 = vld [vmem:[%s1110_s9 + $0x8] sm:$0xff]   ;;  %p253_p9 = scmp.lt.s32.totalorder %s913_s15, 2  ;;  %s685_s22 = smul.u32 56, %s1106_s28 }
  0x5d   : > { %645 = vmatprep.subr.bf16.mxu0 %v765_v0  ;;  %669 = vmatprep.subr.bf16.mxu1 %v765_v0  ;;  %v767_v2 = vld [vmem:[%s1110_s9 + $0x10] sm:$0xff]   ;;  %v768_v3 = vld [vmem:[%s1110_s9 + $0x18] sm:$0xff]   ;;  %v773_v4 = vld [vmem:[#allocation3] sm:$0xff]   ;;  %s630_s4 = sshll.u32 %s913_s15, 7  ;;  %s479_s7 = scalar_lea.sflag [#allocation5], %s1106_s28 }
  0x5e   : > { %646 = vmatpush3.bf16.msra.mxu0 %v765_v0  ;;  %677 = vmatpush3.bf16.msra.mxu1 %v765_v0  ;;  %v774_v5 = vld [vmem:[#allocation3 + $0x10] sm:$0xff]   ;;  %v769_v6 = vld [vmem:[%s1110_s9 + $0x20] sm:$0xff]   ;;  %v770_v7 = vld [vmem:[%s1110_s9 + $0x28] sm:$0xff]   ;;  %s254_s20 = scalar_select %p253_p9, %s913_s15, 2 }
  0x5f   : > { %647 = vmatprep.subr.bf16.mxu0 %v766_v1  ;;  %670 = vmatprep.subr.bf16.mxu1 %v766_v1  ;;  %v771_v8 = vld [vmem:[%s1110_s9 + $0x30] sm:$0xff]   ;;  %v772_v9 = vld [vmem:[%s1110_s9 + $0x38] sm:$0xff]   ;;  %s250_s11 = scalar_lea.vmem [#allocation8], %s685_s22  ;;  %s1136_s27 = scalar_lea.hbm %s1187_s3, %s630_s4 }
  0x60   : > { %661 = vmatprep.mubr.bf16.mxu0 %v773_v4  ;;  %665 = vmatprep.mubr.bf16.mxu1 %v774_v5  ;;  %v775_v10 = vld [vmem:[#allocation3 + $0x8] sm:$0xff]   ;;  %v776_v11 = vld [vmem:[#allocation3 + $0x18] ss:$0 sps:$4 sm:$0xff]   ;;  %s255_s10 = scalar_lea.vmem %s1186_s2, %s254_s20  ;;  %s494_s26 = sshll.u32 %s250_s11, 4  ;;  %s1131_s26 = int_to_ptr.vmem [resolvable:$true] %s494_s26 }
  0x61   : > { %v629_v12 = vld [vmem:[%s255_s10] ss:$0 sm:$0xff]  ;;  %s835_s18 = scalar_lea.vmem %s1131_s26, 896  ;;  %p1208_p4 = scmp.ne.s32.totalorder %s1198_s23, 0 }
  0x62   : > { %648 = vmatpush3.bf16.msra.mxu0 %v766_v1  ;;  %678 = vmatpush3.bf16.msra.mxu1 %v766_v1  ;;  %p836_p11 = scmp.ne.s32.totalorder %s1131_s26, %s835_s18  ;;  %s928_s8 = smov [#allocation8]  }
  0x63   : > { %649 = vmatprep.subr.bf16.mxu0 %v767_v2  ;;  %671 = vmatprep.subr.bf16.mxu1 %v767_v2  ;;  %s839_s29 = sshll.u32 %s928_s8, 4  ;;  %s840_s29 = int_to_ptr.vmem [resolvable:$false] %s839_s29 }
  0x64   : > { %p837_p13 = pnand %p836_p11, %p1208_p4  ;;  %s841_s6 = scalar_lea.vmem %s840_s29, 1792 }
  0x65   : > { %p842_p10 = scmp.lt.s32.totalorder %s1131_s26, %s840_s29  ;;  %p843_p3 = scmp.lt.s32.totalorder %s841_s6, %s835_s18 }
  0x66   : > { %650 = vmatpush3.bf16.msra.mxu0 %v767_v2  ;;  %679 = vmatpush3.bf16.msra.mxu1 %v767_v2  ;;  %p838_p0 = pneg %p837_p13 }
  0x67   : > { %651 = vmatprep.subr.bf16.mxu0 %v768_v3  ;;  %672 = vmatprep.subr.bf16.mxu1 %v768_v3  ;;  %p844_p6 = por %p843_p3, %p842_p10 }
  0x69   : > { %p845_p1 = pnand %p844_p6, %p838_p0 }
  0x6a   : > { %652 = vmatpush3.bf16.msra.mxu0 %v768_v3  ;;  %680 = vmatpush3.bf16.msra.mxu1 %v768_v3 }
  0x6b   : > { %653 = vmatprep.subr.bf16.mxu0 %v769_v6  ;;  %673 = vmatprep.subr.bf16.mxu1 %v769_v6 }
  0x6e   : > { %654 = vmatpush3.bf16.msra.mxu0 %v769_v6  ;;  %681 = vmatpush3.bf16.msra.mxu1 %v769_v6 }
  0x6f   : > { %655 = vmatprep.subr.bf16.mxu0 %v770_v7  ;;  %674 = vmatprep.subr.bf16.mxu1 %v770_v7 }
  0x72   : > { %656 = vmatpush3.bf16.msra.mxu0 %v770_v7  ;;  %682 = vmatpush3.bf16.msra.mxu1 %v770_v7 }
  0x73   : > { %657 = vmatprep.subr.bf16.mxu0 %v771_v8  ;;  %675 = vmatprep.subr.bf16.mxu1 %v771_v8 }
  0x76   : > { %658 = vmatpush3.bf16.msra.mxu0 %v771_v8  ;;  %683 = vmatpush3.bf16.msra.mxu1 %v771_v8 }
  0x77   : > { %659 = vmatprep.subr.bf16.mxu0 %v772_v9  ;;  %676 = vmatprep.subr.bf16.mxu1 %v772_v9 }
  0x7a   : > { %660 = vmatpush3.bf16.msra.mxu0 %v772_v9  ;;  %684 = vmatpush3.bf16.msra.mxu1 %v772_v9 }
  0x7d   : > { %662 = vmatmul.mubr.bf16.vlgmr.msra.gmra.mrb[0].mxu0 %v775_v10  ;;  %666 = vmatmul.mubr.bf16.vlgmr.msra.gmra.mrb[0].mxu1 %v776_v11 }
 0x150   : > { %v663_v13 = vpop.f32.mrb[0].mxu0  ;;  %v667_v14 = vpop.f32.mrb[0].mxu1 }
 0x151   : > { %v466_v15 = vadd.f32 %v663_v13, %v629_v12  ;;  %v470_v16 = vadd.f32 %v667_v14, %v629_v12  ;;  %v403_v17 = vpop.f32.mrb[1].mxu0  ;;  %v419_v18 = vpop.f32.mrb[1].mxu1 }
 0x152   : > { %v464_v19 = vadd.f32 %v629_v12, %v403_v17  ;;  %v468_v20 = vadd.f32 %v629_v12, %v419_v18  ;;  %v664_v21 = vpop.f32.mrb[2].mxu0  ;;  %v668_v22 = vpop.f32.mrb[2].mxu1 }
 0x153   : > { %473 = vst [vmem:[%s250_s11 + $0x10] sm:$0xff] %v466_v15  ;;  %477 = vst [vmem:[%s250_s11 + $0x30] sm:$0xff] %v470_v16  ;;  %v467_v23 = vadd.f32 %v664_v21, %v629_v12  ;;  %v406_v24 = vpop.f32.mrb[3].mxu0  ;;  %v422_v25 = vpop.f32.mrb[3].mxu1 }
 0x154   : > { %471 = vst [vmem:[%s250_s11] sm:$0xff] %v464_v19  ;;  %475 = vst [vmem:[%s250_s11 + $0x20] sm:$0xff] %v468_v20  ;;  %v465_v26 = vadd.f32 %v629_v12, %v406_v24  ;;  %v469_v27 = vadd.f32 %v629_v12, %v422_v25 }
 0x155   : > { %474 = vst [vmem:[%s250_s11 + $0x18] sm:$0xff] %v467_v23 }
 0x156   : > { %472 = vst [vmem:[%s250_s11 + $0x8] sm:$0xff] %v465_v26  ;;  %476 = vst [vmem:[%s250_s11 + $0x28] sm:$0xff] %v469_v27 }
 0x157   : > { %848 = shalt.err (!%p845_p1)
}
 0x158   : > { %s849_s9 = scalar_lea.hbm %s1136_s27, 896  ;;  %s853_s25 = scalar_lea.hbm %s1187_s3, 2688 }
 0x159   : > { %p850_p5 = scmp.ne.s32.totalorder %s1136_s27, %s849_s9  ;;  %p854_p2 = scmp.lt.u32.totalorder %s1136_s27, %s1187_s3 }
 0x15a   : > { %p855_p8 = scmp.lt.u32.totalorder %s853_s25, %s849_s9  ;;  %p857_p11 = scmp.lt.u32.totalorder %s849_s9, %s1136_s27 }
 0x15b   : > { %p851_p7 = pnand %p850_p5, %p1208_p4 }
 0x15c   : > { %p856_p9 = por %p855_p8, %p854_p2 }
 0x15d   : > { %p852_p12 = pneg %p851_p7 }
 0x15e   : > { %p858_p13 = por %p857_p11, %p856_p9 }
 0x160   : > { %p859_p0 = pnand %p858_p13, %p852_p12 }
 0x162   : > { %862 = shalt.err (!%p859_p0)
}
 0x163   : > { %s929_s11 = smov 128   ;;  %s930_s4 = smov 384  }
 0x164   : > { %s931_s15 = smov 8  }
 0x165   : > { %692 = dma.vmem_to_hbm [thread:$0]  (%p1208_p4), %s1131_s26, 896, %s1136_s27, %s479_s7, %s929_s11, %s930_s4, %s931_s15  }
 0x166 PF: > { %p709_p10 = scmp.ge.s32.totalorder %s921_s17, 2  ;;  %s509_s5 = sand.u32 1, %s901_s12  }
 0x167   : > { %p1209_p3 = scmp.ne.s32.totalorder %s1199_s24, 0  ;;  %s510_s18 = scalar_lea.sflag [#allocation5], %s509_s5 }
 0x169   : > { %p703_p6 = pnand %p709_p10, %p1209_p3 }
 0x16b   : > { %896 = dma.done.wait (!%p703_p6), %s510_s18, 896  }
 0x16c   : > { %898 = vsyncadd (!%p703_p6), %s510_s18, 4294966400  ;;  %s20_s17 = sadd.s32 1, %s921_s17   ;;  %s1210_s12 = smov %s905_s13 }
 0x16d   : > { %p17_p1 = scmp.ge.s32.totalorder %s20_s17, 5   ;;  %s1211_s13 = smov %s909_s14 }
 0x16e   : > { %s1212_s14 = smov %s1065_s21  ;;  %s1213_s15 = smov %s917_s16 }
 0x16f   : > { %s1214_s16 = smov %s1216_s30  ;;  %19 = sbr.rel (!%p17_p1) target bundleno = 7 (0x7), region = 94 }
 0x176   :  { %515 = vsyncpa [#allocation4], 1 }
 0x177   :  { %517 = vsyncpa [#allocation4 + $0x1], 1 }
 0x178   :  { %518 = vsyncpa [#allocation7], 1 }
 0x179   :  { %520 = vsyncpa [#allocation7 + $0x1], 1 }
 0x17a   :  { %521 = vsyncpa [#allocation5], 1 }
 0x17b   :  { %523 = vsyncpa [#allocation5 + $0x1], 1 }

</bundles_post_ra>
